<compile_context>
chip_gen: v5e
topology: v5e:2x2
jax: 0.10.0
libtpu: 0.0.40
codegen_flags: <defaults>
</compile_context>

<pallas_src>
import jax
import jax.numpy as jnp
from jax.experimental import pallas as pl
from jax.experimental.pallas import tpu as pltpu

SUBLANE = 8  # f32 vreg sublane count


def _round_up(x, m):
    return (x + m - 1) // m * m


def _ceil_div(a, b):
    return -(-a // b)


# ---------------------------------------------------------------------------
# Pallas kernel (factory closes over the static Fin):
#   lin = b + sum_k x[:, k] * W^T[k, :]     (unrolled VPU FMAs, no MXU)
#   out = sigmoid(lin)                      (EUP exp + approx reciprocal)
# ---------------------------------------------------------------------------
def _make_classifier_kernel(fin):
    def kernel(x_ref, p_ref, o_ref):
        x = x_ref[...]                      # (tm, fin)        f32
        p = p_ref[...]                      # (fin + 1, fout)  f32: W^T rows + bias row
        lin = p[fin:fin + 1, :]             # bias row (1, fout); broadcasts over rows
        for k in range(fin):                # fin is tiny & static -> fully unrolled
            lin = lin + x[:, k:k + 1] * p[k:k + 1, :]
        sig = pl.reciprocal(1.0 + jnp.exp(-lin), approx=True)
        o_ref[...] = sig.astype(o_ref.dtype)

    return kernel


# ---------------------------------------------------------------------------
# One-time parameter packing (hoisted out of the per-call hot path).
# ---------------------------------------------------------------------------
def prepare_classifier_params(w, b):
    """Pack PyTorch-layout W (Fout, Fin) and b (Fout,) into one (Fin+1, Fout) slab."""
    w = jnp.asarray(w, jnp.float32)
    b = jnp.asarray(b, jnp.float32)
    return jnp.concatenate([w.T, b[None, :]], axis=0)


# ---------------------------------------------------------------------------
# Forward wrapper: row-only padding + single fused pallas_call + row un-pad.
# ---------------------------------------------------------------------------
def classifier_forward(x, params, *, row_tile=1024):
    """sigmoid(x @ W^T + b) with params = prepare_classifier_params(W, b).

    x:      (N, Fin) features
    params: (Fin+1, Fout) packed W^T (rows 0..Fin-1) and bias (row Fin)
    returns (N, Fout) float32
    """
    x = x.astype(jnp.float32)
    n, fin = x.shape
    fin_plus_1, fout = params.shape
    assert fin_plus_1 == fin + 1, "params must be (Fin+1, Fout) from prepare_classifier_params"

    # Row tiling: pad N only to a multiple of 8 and split evenly into 8-aligned
    # tiles (<= 7 ghost rows per tile).  Grid axis is "parallel" so multiple
    # tiles shard across TensorCores on v7x.
    n8 = _round_up(n, SUBLANE)
    num_tiles = max(1, _ceil_div(n8, row_tile))
    tm = _round_up(_ceil_div(n8, num_tiles), SUBLANE)
    n_p = tm * num_tiles

    x_p = x if n_p == n else jnp.zeros((n_p, fin), jnp.float32).at[:n, :].set(x)

    out = pl.pallas_call(
        _make_classifier_kernel(fin),
        out_shape=jax.ShapeDtypeStruct((n_p, fout), jnp.float32),
        grid_spec=pltpu.PrefetchScalarGridSpec(
            num_scalar_prefetch=0,
            grid=(num_tiles,),
            in_specs=[
                pl.BlockSpec((tm, fin), lambda i: (i, 0)),         # X row tile (no K padding)
                pl.BlockSpec((fin + 1, fout), lambda i: (0, 0)),   # packed W^T|b, grid-invariant
            ],
            out_specs=pl.BlockSpec((tm, fout), lambda i: (i, 0)),  # native-width output
        ),
        compiler_params=pltpu.CompilerParams(
            dimension_semantics=("parallel",),
        ),
    )(x_p, params)

    return out if n_p == n else out[:n, :]


# ---------------------------------------------------------------------------
# Parameter init matching the PyTorch module:
#   weight: xavier_normal_ (gain=1), bias: default nn.Linear uniform init.
# ---------------------------------------------------------------------------
def init_classifier_params(key, input_size, output_size):
    wkey, bkey = jax.random.split(key)
    std = jnp.sqrt(2.0 / (input_size + output_size))
    w = jax.random.normal(wkey, (output_size, input_size), jnp.float32) * std
    bound = 1.0 / jnp.sqrt(jnp.float32(input_size))
    b = jax.random.uniform(bkey, (output_size,), jnp.float32, -bound, bound)
    return w, b


# ---------------------------------------------------------------------------
# Main
# ---------------------------------------------------------------------------
if __name__ == "__main__":
    key = jax.random.PRNGKey(0)

    # Karate-club-like setup: 34 nodes, 2-d embeddings, 2 output classes.
    N, input_size, output_size = 34, 2, 2

    key, xkey, pkey = jax.random.split(key, 3)
    X = jax.random.normal(xkey, (N, input_size), dtype=jnp.float32)
    W, B = init_classifier_params(pkey, input_size, output_size)

    # One-time packing (outside the per-call hot path).
    params = prepare_classifier_params(W, B)

    fwd = jax.jit(classifier_forward)
    out = jax.block_until_ready(fwd(X, params))

    # Pure-JAX reference (same f32 math as the PyTorch forward after .to(float)).
    ref = jax.nn.sigmoid(X @ W.T + B)

    assert out.shape == (N, output_size)
    assert bool(jnp.all(jnp.isfinite(out)))
    # approx=True reciprocal (EUP vrcp) -> tolerance loosened from 1e-5 to 2e-3.
    assert bool(jnp.allclose(out, ref, atol=2e-3, rtol=2e-3))
    print("KERNEL_OK")
</pallas_src>

<mosaic_0001>
module attributes {stable_mosaic.version = 11 : i64} {
  func.func @kernel(%arg0: i32, %arg1: memref<40x2xf32, #tpu.memory_space<vmem>>, %arg2: memref<3x2xf32, #tpu.memory_space<vmem>>, %arg3: memref<40x2xf32, #tpu.memory_space<vmem>>) attributes {dimension_semantics = [#tpu.dimension_semantics<parallel>], iteration_bounds = array<i64: 1>, scalar_prefetch = 0 : i64, scratch_operands = 0 : i64, tpu.core_type = #tpu.core_type<tc>, window_params = [{transform_indices = @transform_0, window_bounds = array<i64: 40, 2>}, {pipeline_mode = #tpu.pipeline_mode<synchronous>, transform_indices = @transform_1, window_bounds = array<i64: 3, 2>}, {transform_indices = @transform_2, window_bounds = array<i64: 40, 2>}]} {
    %c0 = arith.constant 0 : index
    %c0_0 = arith.constant 0 : index
    %0 = vector.load %arg1[%c0, %c0_0] : memref<40x2xf32, #tpu.memory_space<vmem>>, vector<40x2xf32>
    %c0_1 = arith.constant 0 : index
    %c0_2 = arith.constant 0 : index
    %1 = vector.load %arg2[%c0_1, %c0_2] : memref<3x2xf32, #tpu.memory_space<vmem>>, vector<3x2xf32>
    %2 = vector.extract_strided_slice %1 {offsets = [2, 0], sizes = [1, 2], strides = [1, 1]} : vector<3x2xf32> to vector<1x2xf32>
    %3 = vector.extract_strided_slice %0 {offsets = [0, 0], sizes = [40, 1], strides = [1, 1]} : vector<40x2xf32> to vector<40x1xf32>
    %4 = vector.extract_strided_slice %1 {offsets = [0, 0], sizes = [1, 2], strides = [1, 1]} : vector<3x2xf32> to vector<1x2xf32>
    %5 = vector.broadcast %3 : vector<40x1xf32> to vector<40x2xf32>
    %6 = vector.broadcast %4 : vector<1x2xf32> to vector<40x2xf32>
    %7 = arith.mulf %5, %6 : vector<40x2xf32>
    %8 = vector.broadcast %2 : vector<1x2xf32> to vector<40x2xf32>
    %9 = arith.addf %8, %7 : vector<40x2xf32>
    %10 = vector.extract_strided_slice %0 {offsets = [0, 1], sizes = [40, 1], strides = [1, 1]} : vector<40x2xf32> to vector<40x1xf32>
    %11 = vector.extract_strided_slice %1 {offsets = [1, 0], sizes = [1, 2], strides = [1, 1]} : vector<3x2xf32> to vector<1x2xf32>
    %12 = vector.broadcast %10 : vector<40x1xf32> to vector<40x2xf32>
    %13 = vector.broadcast %11 : vector<1x2xf32> to vector<40x2xf32>
    %14 = arith.mulf %12, %13 : vector<40x2xf32>
    %15 = arith.addf %9, %14 : vector<40x2xf32>
    %cst = arith.constant 0.000000e+00 : f32
    %16 = vector.broadcast %cst : f32 to vector<40x2xf32>
    %17 = arith.subf %16, %15 : vector<40x2xf32>
    %18 = math.exp %17 : vector<40x2xf32>
    %cst_3 = arith.constant 1.000000e+00 : f32
    %19 = vector.broadcast %cst_3 : f32 to vector<40x2xf32>
    %20 = arith.addf %19, %18 : vector<40x2xf32>
    %21 = tpu.reciprocal %20 {approx = true} : vector<40x2xf32> -> vector<40x2xf32>
    %c0_4 = arith.constant 0 : index
    %c0_5 = arith.constant 0 : index
    %22 = vector.load %arg3[%c0_4, %c0_5] : memref<40x2xf32, #tpu.memory_space<vmem>>, vector<40x2xf32>
    tpu.vector_store %arg3[%c0_4, %c0_5], %21 {strides = array<i32>} : memref<40x2xf32, #tpu.memory_space<vmem>>, vector<40x2xf32>,
    return
  }
  func.func @transform_0(%arg0: i32) -> (i32, i32) {
    %c0_i32 = arith.constant 0 : i32
    %c0_i32_0 = arith.constant 0 : i32
    return %arg0, %c0_i32 : i32, i32
  }
  func.func @transform_1(%arg0: i32) -> (i32, i32) {
    %c0_i32 = arith.constant 0 : i32
    %c0_i32_0 = arith.constant 0 : i32
    %c0_i32_1 = arith.constant 0 : i32
    return %c0_i32, %c0_i32_0 : i32, i32
  }
  func.func @transform_2(%arg0: i32) -> (i32, i32) {
    %c0_i32 = arith.constant 0 : i32
    %c0_i32_0 = arith.constant 0 : i32
    return %arg0, %c0_i32 : i32, i32
  }
}

</mosaic_0001>

<bundles_post_ra>
// kernel: classifier_forward.1
= control target key start
LH: loop header
LB: loop body
LE: loop exit
PB: predicated region body
PF: predicated region fallthrough
CT: control target
= control target key end

     0   :  { %v148_v0 = vmov 0   ;;  %v149_v6 = vmov 1   ;;  %vm110_vm0 = vcmask 15360   ;;  %s203_s0 = inlined_call_operand.vmem [shape: f32[40,2], index: 0, kind: input, shape index: {}]   ;;  %s204_s1 = inlined_call_operand.vmem [shape: f32[3,2], index: 1, kind: input, shape index: {}]   ;;  %s205_s2 = inlined_call_operand.vmem [shape: f32[40,2], index: 2, kind: output, shape index: {}]  }
   0x1   :  { %123 = vset.pattern.permute.xlu1 %v148_v0  ;;  %122 = vset.pattern.permute.xlu0 %v148_v0  ;;  %v13_v1 = vld [vmem:[%s203_s0 + $0x10] sm:$0xff]  ;;  %v11_v2 = vld [vmem:[%s203_s0] sm:$0xff]  ;;  %v14_v4 = vld [vmem:[%s203_s0 + $0x18] sm:$0xff] }
   0x2   :  { %29 = vperm.xlu1 %123, %v13_v1   ;;  %19 = vperm.xlu0 %122, %v11_v2   ;;  %v15_v3 = vld [vmem:[%s203_s0 + $0x20] sm:$0xff]  ;;  %v12_v5 = vld [vmem:[%s203_s0 + $0x8] sm:$0xff] }
   0x3   :  { %124 = vset.pattern.permute.xlu2 %v148_v0  ;;  %v16_v8 = vld [vmem:[%s204_s1] sm:$0x7] }
   0x4   :  { %39 = vperm.xlu2 %124, %v15_v3   ;;  %v74_v10 = vperm.slane %v16_v8, 1  ;;  %v42_v11 = vperm.slane %v16_v8, 0  ;;  %v48_v14 = vperm.slane %v16_v8, 2 }
   0xa   :  { %34 = vperm.xlu1 %123, %v14_v4   ;;  %24 = vperm.xlu0 %122, %v12_v5  }
   0xc   :  { %125 = vset.pattern.permute.xlu2 %v149_v6 }
   0xd   :  { %55 = vperm.xlu2 %125, %v11_v2  }
  0x12   :  { %127 = vset.pattern.permute.xlu1 %v149_v6  ;;  %126 = vset.pattern.permute.xlu0 %v149_v6 }
  0x13   :  { %63 = vperm.xlu1 %127, %v13_v1   ;;  %59 = vperm.xlu0 %126, %v12_v5  }
  0x15   :  { %67 = vperm.xlu2 %125, %v14_v4  }
  0x1b   :  { %71 = vperm.xlu1 %127, %v15_v3  }
  0x5e   :  { %v40_v7 = vpop.permute.xlu2 %39 }
  0x5f   :  { %v47_v42 = vmul.f32 %v42_v11, %v40_v7 }
  0x61   :  { %v53_v50 = vadd.f32 %v48_v14, %v47_v42 }
  0x67   :  { %v56_v9 = vpop.permute.xlu2 %55 }
  0x68   :  { %v75_v16 = vmul.f32 %v74_v10, %v56_v9 }
  0x6f   :  { %v68_v19 = vpop.permute.xlu2 %67 }
  0x70   :  { %v78_v25 = vmul.f32 %v74_v10, %v68_v19 }
  0x74   :  { %v30_v12 = vpop.permute.xlu1 %29  ;;  %v20_v13 = vpop.permute.xlu0 %19 }
  0x75   :  { %v43_v15 = vmul.f32 %v42_v11, %v20_v13  ;;  %v45_v27 = vmul.f32 %v42_v11, %v30_v12 }
  0x77   :  { %v49_v17 = vadd.f32 %v48_v14, %v43_v15  ;;  %v51_v32 = vadd.f32 %v48_v14, %v45_v27 }
  0x79   :  { %v80_v18 = vadd.f32 %v75_v16, %v49_v17 }
  0x7b   :  { %v85_v20 = vsub.f32 0.0, %v80_v18 }
  0x7c   :  { %v35_v21 = vpop.permute.xlu1 %34  ;;  %v25_v22 = vpop.permute.xlu0 %24 }
  0x7d   :  { %v90_v23 = vmul.f32 1.442695, %v85_v20  ;;  %v46_v24 = vmul.f32 %v42_v11, %v35_v21  ;;  %v44_v29 = vmul.f32 %v42_v11, %v25_v22 }
  0x7f   :  { %128 = vpow2.f32 %v90_v23  ;;  %v52_v26 = vadd.f32 %v48_v14, %v46_v24  ;;  %v50_v37 = vadd.f32 %v48_v14, %v44_v29 }
  0x81   :  { %v83_v28 = vadd.f32 %v78_v25, %v52_v26 }
  0x83   :  { %v88_v30 = vsub.f32 0.0, %v83_v28 }
  0x85   :  { %v129_v31 = vpop.eup %128  ;;  %v96_v33 = vmul.f32 1.442695, %v88_v30  ;;  %v64_v34 = vpop.permute.xlu1 %63 }
  0x86   :  { %v60_v35 = vpop.permute.xlu0 %59  ;;  %v100_v36 = vadd.f32 1.0, %v129_v31  ;;  %v77_v38 = vmul.f32 %v74_v10, %v64_v34 }
  0x87   :  { %v76_v39 = vmul.f32 %v74_v10, %v60_v35  ;;  %130 = vpow2.f32 %v96_v33 }
  0x88   :  { %132 = vrcp.f32 %v100_v36  ;;  %v82_v40 = vadd.f32 %v77_v38, %v51_v32 }
  0x89   :  { %v81_v41 = vadd.f32 %v76_v39, %v50_v37 }
  0x8a   :  { %v87_v43 = vsub.f32 0.0, %v82_v40 }
  0x8b   :  { %v86_v44 = vsub.f32 0.0, %v81_v41 }
  0x8c   :  { %v94_v45 = vmul.f32 1.442695, %v87_v43 }
  0x8d   :  { %v92_v46 = vmul.f32 1.442695, %v86_v44  ;;  %v131_v47 = vpop.eup %130  ;;  %v72_v48 = vpop.permute.xlu1 %71 }
  0x8e   :  { %v133_v49 = vpop.eup %132  ;;  %v103_v51 = vadd.f32 1.0, %v131_v47  ;;  %134 = vpow2.f32 %v94_v45  ;;  %v79_v52 = vmul.f32 %v74_v10, %v72_v48 }
  0x8f   :  { %111 = vst.msk [vmem:[%s205_s2] sm:$0xff] %vm110_vm0, %v133_v49  ;;  %136 = vpow2.f32 %v92_v46 }
  0x90   :  { %138 = vrcp.f32 %v103_v51  ;;  %v84_v53 = vadd.f32 %v79_v52, %v53_v50 }
  0x92   :  { %v89_v54 = vsub.f32 0.0, %v84_v53 }
  0x94   :  { %v135_v55 = vpop.eup %134  ;;  %v98_v56 = vmul.f32 1.442695, %v89_v54 }
  0x95   :  { %v137_v57 = vpop.eup %136  ;;  %v102_v58 = vadd.f32 1.0, %v135_v55 }
  0x96   :  { %v139_v59 = vpop.eup %138  ;;  %v101_v60 = vadd.f32 1.0, %v137_v57  ;;  %140 = vpow2.f32 %v98_v56 }
  0x97   :  { %114 = vst.msk [vmem:[%s205_s2 + $0x18] sm:$0xff] %vm110_vm0, %v139_v59  ;;  %142 = vrcp.f32 %v102_v58 }
  0x98   :  { %144 = vrcp.f32 %v101_v60 }
  0x9c   :  { %v141_v61 = vpop.eup %140 }
  0x9d   :  { %v143_v62 = vpop.eup %142  ;;  %v104_v63 = vadd.f32 1.0, %v141_v61 }
  0x9e   :  { %v145_v0 = vpop.eup %144  ;;  %113 = vst.msk [vmem:[%s205_s2 + $0x10] sm:$0xff] %vm110_vm0, %v143_v62 }
  0x9f   :  { %112 = vst.msk [vmem:[%s205_s2 + $0x8] sm:$0xff] %vm110_vm0, %v145_v0  ;;  %146 = vrcp.f32 %v104_v63 }
  0xa5   :  { %v147_v1 = vpop.eup %146 }
  0xa6   :  { %115 = vst.msk [vmem:[%s205_s2 + $0x20] sm:$0xff] %vm110_vm0, %v147_v1 }

</bundles_post_ra>
